<compile_context>
chip_gen: v7x
topology: tpu7x:2x2x1
jax: 0.10.0
libtpu: 0.0.40
codegen_flags: <defaults>
</compile_context>

<pallas_src>
import functools
import math

import jax
import jax.numpy as jnp
from jax.experimental import pallas as pl
from jax.experimental.pallas import tpu as pltpu

_LANE = 128
_SUBLANE = 8


def _round_up(x, m):
    return ((x + m - 1) // m) * m


def _bone_loss_kernel(*refs, ndim_d, use_weight):
    """Fused bone-length + weighted batch-sum kernel.

    refs (weighted):   do_ref [D,Bp,tn], dt_ref [D,Bp,tn], w_ref [Bp,tn],
                       out_ref [1,1], acc_ref [Bp,tn]
    refs (unweighted): do_ref, dt_ref, out_ref, acc_ref
    """
    if use_weight:
        do_ref, dt_ref, w_ref, out_ref, acc_ref = refs
    else:
        do_ref, dt_ref, out_ref, acc_ref = refs
        w_ref = None

    i = pl.program_id(0)

    @pl.when(i == 0)
    def _():
        acc_ref[...] = jnp.zeros_like(acc_ref)

    # Squared norm over the (small, static) D axis: pure VPU adds, unrolled.
    sq_o = do_ref[0] * do_ref[0]
    sq_t = dt_ref[0] * dt_ref[0]
    for d in range(1, ndim_d):
        sq_o = sq_o + do_ref[d] * do_ref[d]
        sq_t = sq_t + dt_ref[d] * dt_ref[d]

    # Bone-length difference per (bone, batch-element). Padded positions have
    # zero diff vectors -> len 0 -> contribute exactly 0.
    contrib = jnp.sqrt(sq_o) - jnp.sqrt(sq_t)          # [Bp, tn]
    if use_weight:
        contrib = contrib * w_ref[...]

    # Vector-shaped accumulator: elementwise add only (no per-step XLU reduce,
    # no loop-carried scalar chain).
    acc_ref[...] += contrib

    @pl.when(i == pl.num_programs(0) - 1)
    def _():
        # Single final reduction: per-bone sum over batch (lanes), abs,
        # sum over bones (sublanes).
        per_bone = jnp.sum(acc_ref[...], axis=1, keepdims=True)            # [Bp, 1]
        out_ref[...] = jnp.sum(jnp.abs(per_bone), axis=0, keepdims=True)   # [1, 1]


def bone_loss(
    output,
    target,
    target_weight=None,
    *,
    joint_parents,
    use_target_weight=False,
    loss_weight=1.0,
    max_tile_n=2048,
):
    """Forward pass matching BoneLoss.forward."""
    output = jnp.asarray(output, jnp.float32)
    target = jnp.asarray(target, jnp.float32)
    N, K, D = output.shape

    parents = tuple(int(p) for p in joint_parents)
    assert len(parents) == K
    non_root = tuple(i for i in range(K) if parents[i] != i)
    B = len(non_root)

    p_idx = jnp.asarray(parents, jnp.int32)
    nr_idx = jnp.asarray(non_root, jnp.int32)

    def bone_vectors(x):
        # Static-index gather of parent joints + non-root selection, then
        # transpose to [D, B, N] (bones on sublanes, batch on lanes).
        d = x - jnp.take(x, p_idx, axis=1)
        d = jnp.take(d, nr_idx, axis=1)           # [N, B, D]
        return jnp.transpose(d, (2, 1, 0))        # [D, B, N]

    do = bone_vectors(output)
    dt = bone_vectors(target)

    # Padding / tiling. Bones -> multiple of 8 (sublane), batch -> multiple of
    # 128 (lane); large lane tiles so the grid has few, big steps.
    Bp = _round_up(max(B, _SUBLANE), _SUBLANE)
    n_pad0 = _round_up(max(N, _LANE), _LANE)
    tile_n = min(n_pad0, _round_up(max_tile_n, _LANE))
    Np = _round_up(n_pad0, tile_n)

    def pad_dbn(x):
        return jnp.pad(x, ((0, 0), (0, Bp - B), (0, Np - N)))

    do = pad_dbn(do)
    dt = pad_dbn(dt)

    diff_spec = pl.BlockSpec((D, Bp, tile_n), lambda i: (0, 0, i))
    args = [do, dt]
    in_specs = [diff_spec, diff_spec]

    use_weight = bool(use_target_weight)
    if use_weight:
        assert target_weight is not None
        w = jnp.asarray(target_weight, jnp.float32)
        if w.ndim == 3 and w.shape[-1] == 1:
            w = w[..., 0]
        assert w.shape == (N, B), f"target_weight must be [N, {B}], got {w.shape}"
        w = jnp.pad(jnp.transpose(w, (1, 0)), ((0, Bp - B), (0, Np - N)))  # [Bp, Np]
        args.append(w)
        in_specs = in_specs + [pl.BlockSpec((Bp, tile_n), lambda i: (0, i))]

    grid = (Np // tile_n,)

    total = pl.pallas_call(
        functools.partial(_bone_loss_kernel, ndim_d=D, use_weight=use_weight),
        out_shape=jax.ShapeDtypeStruct((1, 1), jnp.float32),
        grid_spec=pltpu.PrefetchScalarGridSpec(
            num_scalar_prefetch=0,
            grid=grid,
            in_specs=in_specs,
            out_specs=pl.BlockSpec((1, 1), lambda i: (0, 0)),
            scratch_shapes=[pltpu.VMEM((Bp, tile_n), jnp.float32)],
        ),
        compiler_params=pltpu.CompilerParams(
            dimension_semantics=("arbitrary",)),
    )(*args)

    # loss = (1/B) * sum_b | (1/N) * sum_n (bone_o - bone_t) * w |
    scale = jnp.float32(loss_weight) / jnp.float32(N * B)
    return total[0, 0] * scale


def _reference(output, target, target_weight, joint_parents,
               use_target_weight, loss_weight):
    """Pure-JAX reference matching the PyTorch module."""
    parents = jnp.asarray([int(p) for p in joint_parents], jnp.int32)
    non_root = jnp.asarray(
        [i for i in range(len(joint_parents)) if joint_parents[i] != i], jnp.int32)
    ob = jnp.linalg.norm(output - jnp.take(output, parents, axis=1), axis=-1)
    tb = jnp.linalg.norm(target - jnp.take(target, parents, axis=1), axis=-1)
    ob = jnp.take(ob, non_root, axis=1)
    tb = jnp.take(tb, non_root, axis=1)
    if use_target_weight:
        loss = jnp.mean(jnp.abs((ob * target_weight).mean(axis=0)
                                - (tb * target_weight).mean(axis=0)))
    else:
        loss = jnp.mean(jnp.abs(ob.mean(axis=0) - tb.mean(axis=0)))
    return loss * loss_weight


if __name__ == "__main__":
    key = jax.random.PRNGKey(0)
    k1, k2, k3, k4, k5 = jax.random.split(key, 5)

    # 17-joint skeleton (H36M-style parents); 16 bones.
    joint_parents = [0, 0, 1, 2, 0, 4, 5, 0, 7, 8, 9, 8, 11, 12, 8, 14, 15]
    K = len(joint_parents)
    B = sum(1 for i in range(K) if joint_parents[i] != i)

    # Config 1: 3D keypoints, no target weight.
    N1, D1 = 2, 3
    out1 = jax.random.normal(k1, (N1, K, D1), jnp.float32)
    tgt1 = jax.random.normal(k2, (N1, K, D1), jnp.float32)
    loss1 = bone_loss(out1, tgt1, joint_parents=joint_parents,
                      use_target_weight=False, loss_weight=1.0)
    ref1 = _reference(out1, tgt1, None, joint_parents, False, 1.0)

    # Config 2: 2D keypoints, per-bone target weights, loss_weight=0.5.
    N2, D2 = 4, 2
    out2 = jax.random.normal(k3, (N2, K, D2), jnp.float32)
    tgt2 = jax.random.normal(k4, (N2, K, D2), jnp.float32)
    tw2 = jax.random.uniform(k5, (N2, B), jnp.float32)
    tw2 = jnp.where(tw2 < 0.25, 0.0, tw2)
    loss2 = bone_loss(out2, tgt2, tw2, joint_parents=joint_parents,
                      use_target_weight=True, loss_weight=0.5)
    ref2 = _reference(out2, tgt2, tw2, joint_parents, True, 0.5)

    jax.block_until_ready((loss1, loss2))

    assert jnp.allclose(loss1, ref1, rtol=1e-4, atol=1e-5), (loss1, ref1)
    assert jnp.allclose(loss2, ref2, rtol=1e-4, atol=1e-5), (loss2, ref2)

    print("KERNEL_OK")
</pallas_src>

<mosaic_0001>
module attributes {stable_mosaic.version = 11 : i64} {
  func.func @_bone_loss_kernel(%arg0: i32, %arg1: memref<3x16x128xf32, #tpu.memory_space<vmem>>, %arg2: memref<3x16x128xf32, #tpu.memory_space<vmem>>, %arg3: memref<1x1xf32, #tpu.memory_space<vmem>>, %arg4: memref<16x128xf32, #tpu.memory_space<vmem>>) attributes {dimension_semantics = [#tpu.dimension_semantics<arbitrary>], iteration_bounds = array<i64: 1>, scalar_prefetch = 0 : i64, scratch_operands = 1 : i64, tpu.core_type = #tpu.core_type<tc>, window_params = [{transform_indices = @transform_0, window_bounds = array<i64: 3, 16, 128>}, {transform_indices = @transform_1, window_bounds = array<i64: 3, 16, 128>}, {pipeline_mode = #tpu.pipeline_mode<synchronous>, transform_indices = @transform_2, window_bounds = array<i64: 1, 1>}]} {
    %c0_i32 = arith.constant 0 : i32
    %0 = arith.cmpi eq, %arg0, %c0_i32 : i32
    %1 = arith.extui %0 : i1 to i32
    %c0_i32_0 = arith.constant 0 : i32
    %2 = arith.cmpi ne, %1, %c0_i32_0 : i32
    scf.if %2 {
      %cst = arith.constant 0.000000e+00 : f32
      %46 = vector.broadcast %cst : f32 to vector<16x128xf32>
      %c0_40 = arith.constant 0 : index
      %c0_41 = arith.constant 0 : index
      %47 = vector.load %arg4[%c0_40, %c0_41] : memref<16x128xf32, #tpu.memory_space<vmem>>, vector<16x128xf32>
      tpu.vector_store %arg4[%c0_40, %c0_41], %46 {strides = array<i32>} : memref<16x128xf32, #tpu.memory_space<vmem>>, vector<16x128xf32>,
    } else {
    }
    %c0 = arith.constant 0 : index
    %c0_1 = arith.constant 0 : index
    %c0_2 = arith.constant 0 : index
    %3 = vector.load %arg1[%c0, %c0_1, %c0_2] : memref<3x16x128xf32, #tpu.memory_space<vmem>>, vector<1x16x128xf32>
    %4 = vector.shape_cast %3 : vector<1x16x128xf32> to vector<16x128xf32>
    %c0_3 = arith.constant 0 : index
    %c0_4 = arith.constant 0 : index
    %c0_5 = arith.constant 0 : index
    %5 = vector.load %arg1[%c0_3, %c0_4, %c0_5] : memref<3x16x128xf32, #tpu.memory_space<vmem>>, vector<1x16x128xf32>
    %6 = vector.shape_cast %5 : vector<1x16x128xf32> to vector<16x128xf32>
    %7 = arith.mulf %4, %6 : vector<16x128xf32>
    %c0_6 = arith.constant 0 : index
    %c0_7 = arith.constant 0 : index
    %c0_8 = arith.constant 0 : index
    %8 = vector.load %arg2[%c0_6, %c0_7, %c0_8] : memref<3x16x128xf32, #tpu.memory_space<vmem>>, vector<1x16x128xf32>
    %9 = vector.shape_cast %8 : vector<1x16x128xf32> to vector<16x128xf32>
    %c0_9 = arith.constant 0 : index
    %c0_10 = arith.constant 0 : index
    %c0_11 = arith.constant 0 : index
    %10 = vector.load %arg2[%c0_9, %c0_10, %c0_11] : memref<3x16x128xf32, #tpu.memory_space<vmem>>, vector<1x16x128xf32>
    %11 = vector.shape_cast %10 : vector<1x16x128xf32> to vector<16x128xf32>
    %12 = arith.mulf %9, %11 : vector<16x128xf32>
    %c1 = arith.constant 1 : index
    %c0_12 = arith.constant 0 : index
    %c0_13 = arith.constant 0 : index
    %13 = vector.load %arg1[%c1, %c0_12, %c0_13] : memref<3x16x128xf32, #tpu.memory_space<vmem>>, vector<1x16x128xf32>
    %14 = vector.shape_cast %13 : vector<1x16x128xf32> to vector<16x128xf32>
    %c1_14 = arith.constant 1 : index
    %c0_15 = arith.constant 0 : index
    %c0_16 = arith.constant 0 : index
    %15 = vector.load %arg1[%c1_14, %c0_15, %c0_16] : memref<3x16x128xf32, #tpu.memory_space<vmem>>, vector<1x16x128xf32>
    %16 = vector.shape_cast %15 : vector<1x16x128xf32> to vector<16x128xf32>
    %17 = arith.mulf %14, %16 : vector<16x128xf32>
    %18 = arith.addf %7, %17 : vector<16x128xf32>
    %c1_17 = arith.constant 1 : index
    %c0_18 = arith.constant 0 : index
    %c0_19 = arith.constant 0 : index
    %19 = vector.load %arg2[%c1_17, %c0_18, %c0_19] : memref<3x16x128xf32, #tpu.memory_space<vmem>>, vector<1x16x128xf32>
    %20 = vector.shape_cast %19 : vector<1x16x128xf32> to vector<16x128xf32>
    %c1_20 = arith.constant 1 : index
    %c0_21 = arith.constant 0 : index
    %c0_22 = arith.constant 0 : index
    %21 = vector.load %arg2[%c1_20, %c0_21, %c0_22] : memref<3x16x128xf32, #tpu.memory_space<vmem>>, vector<1x16x128xf32>
    %22 = vector.shape_cast %21 : vector<1x16x128xf32> to vector<16x128xf32>
    %23 = arith.mulf %20, %22 : vector<16x128xf32>
    %24 = arith.addf %12, %23 : vector<16x128xf32>
    %c2 = arith.constant 2 : index
    %c0_23 = arith.constant 0 : index
    %c0_24 = arith.constant 0 : index
    %25 = vector.load %arg1[%c2, %c0_23, %c0_24] : memref<3x16x128xf32, #tpu.memory_space<vmem>>, vector<1x16x128xf32>
    %26 = vector.shape_cast %25 : vector<1x16x128xf32> to vector<16x128xf32>
    %c2_25 = arith.constant 2 : index
    %c0_26 = arith.constant 0 : index
    %c0_27 = arith.constant 0 : index
    %27 = vector.load %arg1[%c2_25, %c0_26, %c0_27] : memref<3x16x128xf32, #tpu.memory_space<vmem>>, vector<1x16x128xf32>
    %28 = vector.shape_cast %27 : vector<1x16x128xf32> to vector<16x128xf32>
    %29 = arith.mulf %26, %28 : vector<16x128xf32>
    %30 = arith.addf %18, %29 : vector<16x128xf32>
    %c2_28 = arith.constant 2 : index
    %c0_29 = arith.constant 0 : index
    %c0_30 = arith.constant 0 : index
    %31 = vector.load %arg2[%c2_28, %c0_29, %c0_30] : memref<3x16x128xf32, #tpu.memory_space<vmem>>, vector<1x16x128xf32>
    %32 = vector.shape_cast %31 : vector<1x16x128xf32> to vector<16x128xf32>
    %c2_31 = arith.constant 2 : index
    %c0_32 = arith.constant 0 : index
    %c0_33 = arith.constant 0 : index
    %33 = vector.load %arg2[%c2_31, %c0_32, %c0_33] : memref<3x16x128xf32, #tpu.memory_space<vmem>>, vector<1x16x128xf32>
    %34 = vector.shape_cast %33 : vector<1x16x128xf32> to vector<16x128xf32>
    %35 = arith.mulf %32, %34 : vector<16x128xf32>
    %36 = arith.addf %24, %35 : vector<16x128xf32>
    %37 = math.sqrt %30 : vector<16x128xf32>
    %38 = math.sqrt %36 : vector<16x128xf32>
    %39 = arith.subf %37, %38 : vector<16x128xf32>
    %c0_34 = arith.constant 0 : index
    %c0_35 = arith.constant 0 : index
    %40 = vector.load %arg4[%c0_34, %c0_35] : memref<16x128xf32, #tpu.memory_space<vmem>>, vector<16x128xf32>
    %41 = arith.addf %40, %39 : vector<16x128xf32>
    %c0_36 = arith.constant 0 : index
    %c0_37 = arith.constant 0 : index
    %42 = vector.load %arg4[%c0_36, %c0_37] : memref<16x128xf32, #tpu.memory_space<vmem>>, vector<16x128xf32>
    tpu.vector_store %arg4[%c0_36, %c0_37], %41 {strides = array<i32>} : memref<16x128xf32, #tpu.memory_space<vmem>>, vector<16x128xf32>,
    %c0_i32_38 = arith.constant 0 : i32
    %43 = arith.cmpi eq, %arg0, %c0_i32_38 : i32
    %44 = arith.extui %43 : i1 to i32
    %c0_i32_39 = arith.constant 0 : i32
    %45 = arith.cmpi ne, %44, %c0_i32_39 : i32
    scf.if %45 {
      %c0_40 = arith.constant 0 : index
      %c0_41 = arith.constant 0 : index
      %46 = vector.load %arg4[%c0_40, %c0_41] : memref<16x128xf32, #tpu.memory_space<vmem>>, vector<16x128xf32>
      %cst = arith.constant dense<0.000000e+00> : vector<16xf32>
      %47 = vector.multi_reduction <add>, %46, %cst [1] : vector<16x128xf32> to vector<16xf32>
      %48 = vector.shape_cast %47 : vector<16xf32> to vector<16x1xf32>
      %49 = math.absf %48 : vector<16x1xf32>
      %cst_42 = arith.constant dense<0.000000e+00> : vector<1xf32>
      %50 = vector.multi_reduction <add>, %49, %cst_42 [0] : vector<16x1xf32> to vector<1xf32>
      %51 = vector.shape_cast %50 : vector<1xf32> to vector<1x1xf32>
      %c0_43 = arith.constant 0 : index
      %c0_44 = arith.constant 0 : index
      %52 = vector.load %arg3[%c0_43, %c0_44] : memref<1x1xf32, #tpu.memory_space<vmem>>, vector<1x1xf32>
      tpu.vector_store %arg3[%c0_43, %c0_44], %51 {strides = array<i32>} : memref<1x1xf32, #tpu.memory_space<vmem>>, vector<1x1xf32>,
    } else {
    }
    return
  }
  func.func @transform_0(%arg0: i32) -> (i32, i32, i32) {
    %c0_i32 = arith.constant 0 : i32
    %c0_i32_0 = arith.constant 0 : i32
    %c0_i32_1 = arith.constant 0 : i32
    return %c0_i32, %c0_i32_0, %arg0 : i32, i32, i32
  }
  func.func @transform_1(%arg0: i32) -> (i32, i32, i32) {
    %c0_i32 = arith.constant 0 : i32
    %c0_i32_0 = arith.constant 0 : i32
    %c0_i32_1 = arith.constant 0 : i32
    return %c0_i32, %c0_i32_0, %arg0 : i32, i32, i32
  }
  func.func @transform_2(%arg0: i32) -> (i32, i32) {
    %c0_i32 = arith.constant 0 : i32
    %c0_i32_0 = arith.constant 0 : i32
    %c0_i32_1 = arith.constant 0 : i32
    return %c0_i32, %c0_i32_0 : i32, i32
  }
}

</mosaic_0001>

<bundles_post_ra>
// kernel: tpu_custom_call.1
= control target key start
LH: loop header
LB: loop body
LE: loop exit
PB: predicated region body
PF: predicated region fallthrough
CT: control target
= control target key end

     0   :  { %7 = vsyncpa [#allocation4], 0  ;;  %s295_s0 = inlined_call_operand.hbm [shape: f32[3,16,128], index: 0, kind: input, shape index: {}]   ;;  %s296_s1 = inlined_call_operand.hbm [shape: f32[3,16,128], index: 1, kind: input, shape index: {}]   ;;  %s297_s2 = inlined_call_operand.hbm [shape: f32[1,1], index: 2, kind: output, shape index: {}]  }
   0x1   :  { %8 = vsyncpa [#allocation7], 0 }
   0x2   :  { %9 = vsyncpa [#allocation5], 0  ;;  %s239_s9 = smov [#allocation3]   ;;  %s167_s13 = scalar_lea.hbm %s295_s0, 768 }
   0x3   :  { %s15_s10 = sshll.u32 %s239_s9, 4  ;;  %p168_p0 = scmp.ne.s32.totalorder %s295_s0, %s167_s13  ;;  %s16_s10 = int_to_ptr.vmem [resolvable:$true] %s15_s10 }
   0x4   :  { %p171_p1 = scmp.lt.u32.totalorder %s167_s13, %s295_s0 }
   0x6   :  { %p173_p2 = pnand %p171_p1, %p168_p0 }
   0x8   :  { %176 = shalt.err (!%p173_p2)
}
   0x9   :  { %s177_s18 = scalar_lea.vmem %s16_s10, 768  ;;  %p182_p4 = scmp.lt.s32.totalorder %s16_s10, %s16_s10 }
   0xa   :  { %p178_p3 = scmp.ne.s32.totalorder %s16_s10, %s177_s18  ;;  %p183_p5 = scmp.lt.s32.totalorder %s177_s18, %s177_s18 }
   0xc   :  { %p184_p6 = por %p183_p5, %p182_p4 }
   0xe   :  { %p185_p7 = pnand %p184_p6, %p178_p3 }
  0x10   :  { %188 = shalt.err (!%p185_p7)
}
  0x11   :  { %s240_s19 = smov 128   ;;  %s241_s20 = smov 8  }
  0x12   :  { %21 = dma.hbm_to_vmem [thread:$0]  %s295_s0, 768, %s16_s10, [#allocation4], %s240_s19, %s240_s19, %s241_s20  }
  0x13   :  { %s242_s23 = smov [#allocation6]   ;;  %s189_s27 = scalar_lea.hbm %s296_s1, 768 }
  0x14   :  { %s27_s24 = sshll.u32 %s242_s23, 4  ;;  %p190_p8 = scmp.ne.s32.totalorder %s296_s1, %s189_s27  ;;  %s28_s24 = int_to_ptr.vmem [resolvable:$true] %s27_s24 }
  0x15   :  { %p193_p9 = scmp.lt.u32.totalorder %s189_s27, %s296_s1 }
  0x17   :  { %p195_p10 = pnand %p193_p9, %p190_p8 }
  0x19   :  { %198 = shalt.err (!%p195_p10)
}
  0x1a   :  { %s199_s4 = scalar_lea.vmem %s28_s24, 768  ;;  %p204_p12 = scmp.lt.s32.totalorder %s28_s24, %s28_s24 }
  0x1b   :  { %p200_p11 = scmp.ne.s32.totalorder %s28_s24, %s199_s4  ;;  %p205_p13 = scmp.lt.s32.totalorder %s199_s4, %s199_s4 }
  0x1d   :  { %p206_p0 = por %p205_p13, %p204_p12 }
  0x1f   :  { %p207_p1 = pnand %p206_p0, %p200_p11 }
  0x21   :  { %210 = shalt.err (!%p207_p1)
}
  0x22   :  { %33 = dma.hbm_to_vmem [thread:$0]  %s296_s1, 768, %s28_s24, [#allocation7], %s240_s19, %s240_s19, %s241_s20  }
  0x23   :  { %233 = dma.done.wait [#allocation4], 768  }
  0x24   :  { %234 = vsyncadd [#allocation4], 4294966528 }
  0x25   :  { %235 = dma.done.wait [#allocation7], 768  }
  0x26   :  { %236 = vsyncadd [#allocation7], 4294966528  ;;  %v46_v0 = vld [vmem:[#allocation3] sm:$0xff]  ;;  %v50_v1 = vld [vmem:[#allocation6] sm:$0xff]  ;;  %s243_s1 = smov [#allocation8]   ;;  %vm136_vm8 = vcmask 0  }
  0x27   :  { %v55_v2 = vld [vmem:[#allocation3 + $0x10] sm:$0xff]  ;;  %v48_v3 = vmul.f32 %v46_v0, %v46_v0  ;;  %v52_v4 = vmul.f32 %v50_v1, %v50_v1  ;;  %v62_v6 = vld [vmem:[#allocation6 + $0x10] sm:$0xff]  ;;  %v47_v12 = vld [vmem:[#allocation3 + $0x8] sm:$0xff]  ;;  %s144_s6 = sshll.u32 %s243_s1, 4  ;;  %s145_s6 = int_to_ptr.vmem [resolvable:$true] %s144_s6 }
  0x28   :  { %v57_v5 = vmul.f32 %v55_v2, %v55_v2  ;;  %v69_v7 = vld [vmem:[#allocation3 + $0x20] sm:$0xff]  ;;  %v76_v8 = vld [vmem:[#allocation6 + $0x20] sm:$0xff]  ;;  %v64_v9 = vmul.f32 %v62_v6, %v62_v6  ;;  %v51_v13 = vld [vmem:[#allocation6 + $0x8] sm:$0xff]  ;;  %v49_v16 = vmul.f32 %v47_v12, %v47_v12  ;;  %s211_s7 = scalar_lea.vmem %s145_s6, 16  ;;  %s215_s8 = scalar_lea.vmem %s145_s6, 32 }
  0x29   :  { %v71_v10 = vmul.f32 %v69_v7, %v69_v7  ;;  %v78_v11 = vmul.f32 %v76_v8, %v76_v8  ;;  %v56_v14 = vld [vmem:[#allocation3 + $0x18] sm:$0xff]  ;;  %v53_v17 = vmul.f32 %v51_v13, %v51_v13  ;;  %v63_v19 = vld [vmem:[#allocation6 + $0x18] sm:$0xff]  ;;  %p212_p2 = scmp.ne.s32.totalorder %s145_s6, %s211_s7  ;;  %p216_p3 = scmp.lt.s32.totalorder %s145_s6, %s145_s6 }
  0x2a   :  { %v59_v15 = vadd.f32 %v57_v5, %v48_v3  ;;  %v58_v18 = vmul.f32 %v56_v14, %v56_v14  ;;  %v70_v20 = vld [vmem:[#allocation3 + $0x28] sm:$0xff]  ;;  %v77_v21 = vld [vmem:[#allocation6 + $0x28] sm:$0xff]  ;;  %v66_v22 = vadd.f32 %v64_v9, %v52_v4  ;;  %v65_v23 = vmul.f32 %v63_v19, %v63_v19  ;;  %p217_p4 = scmp.lt.s32.totalorder %s215_s8, %s211_s7 }
  0x2b   :  { %v72_v26 = vmul.f32 %v70_v20, %v70_v20  ;;  %v79_v27 = vmul.f32 %v77_v21, %v77_v21 }
  0x2c   :  { %v73_v24 = vadd.f32 %v71_v10, %v59_v15  ;;  %v60_v25 = vadd.f32 %v58_v18, %v49_v16  ;;  %v80_v28 = vadd.f32 %v78_v11, %v66_v22  ;;  %v67_v29 = vadd.f32 %v65_v23, %v53_v17  ;;  %p218_p5 = por %p217_p4, %p216_p3 }
  0x2e   :  { %159 = vrsqrt.f32 %v73_v24  ;;  %v74_v30 = vadd.f32 %v72_v26, %v60_v25  ;;  %v81_v31 = vadd.f32 %v79_v27, %v67_v29  ;;  %vm84_vm0 = vcmp.eq.f32.partialorder %v73_v24, inf  ;;  %p219_p6 = pnand %p218_p5, %p212_p2 }
  0x2f   :  { %161 = vrsqrt.f32 %v80_v28  ;;  %v87_v33 = vand.u32 2147483648, %v73_v24  ;;  %vm86_vm1 = vcmp.eq.f32.partialorder %v73_v24, 0.0  ;;  %vm98_vm2 = vcmp.eq.f32.partialorder %v80_v28, inf }
  0x30   :  { %163 = vrsqrt.f32 %v74_v30  ;;  %v101_v36 = vand.u32 2147483648, %v80_v28  ;;  %vm100_vm3 = vcmp.eq.f32.partialorder %v80_v28, 0.0  ;;  %vm91_vm4 = vcmp.eq.f32.partialorder %v74_v30, inf }
  0x31   :  { %165 = vrsqrt.f32 %v81_v31  ;;  %vm93_vm5 = vcmp.eq.f32.partialorder %v74_v30, 0.0  ;;  %v94_v42 = vand.u32 2147483648, %v74_v30  ;;  %vm105_vm6 = vcmp.eq.f32.partialorder %v81_v31, inf }
  0x32   :  { %v108_v46 = vand.u32 2147483648, %v81_v31  ;;  %vm107_vm7 = vcmp.eq.f32.partialorder %v81_v31, 0.0 }
  0x38   :  { %v160_v32 = vpop.eup %159 }
  0x39   :  { %v162_v34 = vpop.eup %161  ;;  %v83_v35 = vmul.f32 %v160_v32, %v73_v24 }
  0x3a   :  { %v97_v37 = vmul.f32 %v162_v34, %v80_v28  ;;  %v164_v39 = vpop.eup %163 }
  0x3b   :  { %v85_v38 = vsel %vm84_vm0, %v73_v24, %v83_v35  ;;  %v166_v43 = vpop.eup %165  ;;  %v90_v45 = vmul.f32 %v164_v39, %v74_v30 }
  0x3c   :  { %v88_v40 = vsel %vm86_vm1, %v87_v33, %v85_v38  ;;  %v99_v41 = vsel %vm98_vm2, %v80_v28, %v97_v37  ;;  %v104_v48 = vmul.f32 %v166_v43, %v81_v31 }
  0x3d   :  { %v102_v44 = vsel %vm100_vm3, %v101_v36, %v99_v41  ;;  %v92_v49 = vsel %vm91_vm4, %v74_v30, %v90_v45 }
  0x3e   :  { %v110_v47 = vsub.f32 %v88_v40, %v102_v44  ;;  %v95_v50 = vsel %vm93_vm5, %v94_v42, %v92_v49  ;;  %v106_v51 = vsel %vm105_vm6, %v81_v31, %v104_v48 }
  0x3f   :  { %v109_v52 = vsel %vm107_vm7, %v108_v46, %v106_v51 }
  0x40   :  { %123 = vadd.xlane.f32.xlu0 %v110_v47  ;;  %v111_v53 = vsub.f32 %v95_v50, %v109_v52 }
  0x44   :  { %125 = vadd.xlane.f32.xlu0 %v111_v53 }
  0xcd   :  { %v124_v54 = vpop.xlane.xlu0 %123 }
  0xce   :  { %v127_v56 = vand.u32 2147483647, %v124_v54 }
  0xd1   :  { %v126_v55 = vpop.xlane.xlu0 %125 }
  0xd2   :  { %v128_v57 = vand.u32 2147483647, %v126_v55 }
  0xd4   :  { %v129_v58 = vadd.f32 %v128_v57, %v127_v56 }
  0xd6   :  { %v130_v59 = vrot.slane %v129_v58, 4 }
  0xd8   :  { %v131_v60 = vadd.f32 %v130_v59, %v129_v58 }
  0xda   :  { %v132_v61 = vrot.slane %v131_v60, 2 }
  0xdc   :  { %v133_v62 = vadd.f32 %v132_v61, %v131_v60 }
  0xde   :  { %v134_v63 = vrot.slane %v133_v62, 1 }
  0xe0   :  { %v135_v0 = vadd.f32 %v134_v63, %v133_v62 }
  0xe2   :  { %137 = vst.msk [vmem:[#allocation8] sm:$0x1] %vm136_vm8, %v135_v0 }
  0xe3   :  { %222 = shalt.err (!%p219_p6)
}
  0xe4   :  { %s223_s11 = scalar_lea.hbm %s297_s2, 16 }
  0xe5   :  { %p224_p7 = scmp.ne.s32.totalorder %s297_s2, %s223_s11  ;;  %p227_p8 = scmp.lt.u32.totalorder %s223_s11, %s297_s2 }
  0xe7   :  { %p229_p9 = pnand %p227_p8, %p224_p7 }
  0xe9   :  { %232 = shalt.err (!%p229_p9)
}
  0xea   :  { %147 = dma.vmem_to_hbm [thread:$0]  %s145_s6, 16, %s297_s2, [#allocation5]  }
  0xeb   :  { %237 = dma.done.wait [#allocation5], 16  }
  0xec   :  { %238 = vsyncadd [#allocation5], 4294967280 }
  0xed   :  { %151 = vsyncpa [#allocation4], 1 }
  0xee   :  { %152 = vsyncpa [#allocation7], 1 }
  0xef   :  { %153 = vsyncpa [#allocation5], 1 }

</bundles_post_ra>
